<compile_context>
chip_gen: v6e
topology: v6e:2x2x1
jax: 0.10.0
libtpu: 0.0.40
codegen_flags: <defaults>
</compile_context>

<pallas_src>
from functools import partial

import jax
import jax.numpy as jnp
from jax.experimental import pallas as pl
from jax.experimental.pallas import tpu as pltpu

IN_DIM = 28 * 28   # 784
HID = 64
OUT = 10


def _round_up(n, m):
    return ((n + m - 1) // m) * m


def mlp_kernel(x_ref, w1_ref, b1_ref, w2_ref, b2_ref,
               w3_ref, b3_ref, w4_ref, b4_ref, o_ref):
    # x tile: (TB, 784) f32 streamed from HBM; cast to bf16 on-chip (halves
    # nothing HBM-side but avoids a whole extra wrapper cast pass). Weights are
    # bf16, biases f32, MXU accumulates in f32.
    x = x_ref[...].astype(jnp.bfloat16)

    h = jnp.dot(x, w1_ref[...],
                preferred_element_type=jnp.float32) + b1_ref[...]
    h = jnp.maximum(h, 0.0).astype(jnp.bfloat16)

    h = jnp.dot(h, w2_ref[...],
                preferred_element_type=jnp.float32) + b2_ref[...]
    h = jnp.maximum(h, 0.0).astype(jnp.bfloat16)

    h = jnp.dot(h, w3_ref[...],
                preferred_element_type=jnp.float32) + b3_ref[...]
    h = jnp.maximum(h, 0.0).astype(jnp.bfloat16)

    # fc4 straight to the real 10 logit columns (no lane padding needed; the
    # (TB, 10) store is masked but only 40 B/row of HBM write).
    logits = jnp.dot(h, w4_ref[...],
                     preferred_element_type=jnp.float32) + b4_ref[...]

    # log_softmax along the feature axis (stable form, row-wise only).
    m = jnp.max(logits, axis=1, keepdims=True)
    shifted = logits - m
    lse = jnp.log(jnp.sum(jnp.exp(shifted), axis=1, keepdims=True))
    o_ref[...] = shifted - lse


@partial(jax.jit, static_argnames=("tb", "core_parallel"))
def net_forward(x, params, *, tb=1024, core_parallel=False):
    """x: (B, 784) float32. params: dict of f32 weights/biases. Returns (B, 10) f32."""
    B = x.shape[0]
    TB = min(tb, _round_up(B, 8))          # batch tile, multiple of 8 sublanes
    grid = (pl.cdiv(B, TB),)               # partial last block handled by Pallas

    # bf16 weights (full-rate MXU), f32 biases; all resident in VMEM.
    w1 = params["w1"].astype(jnp.bfloat16)
    w2 = params["w2"].astype(jnp.bfloat16)
    w3 = params["w3"].astype(jnp.bfloat16)
    w4 = params["w4"].astype(jnp.bfloat16)
    b1 = params["b1"].astype(jnp.float32)
    b2 = params["b2"].astype(jnp.float32)
    b3 = params["b3"].astype(jnp.float32)
    b4 = params["b4"].astype(jnp.float32)

    # Constant index_map -> parameter DMA'd once, stays resident across grid.
    def const(shape):
        return pl.BlockSpec(shape, lambda i: (0, 0))

    # On v7x (2 TensorCores/chip) pass core_parallel=True to shard the batch
    # grid across both cores; plain "parallel" is safe on all generations.
    batch_sem = (pltpu.CORE_PARALLEL,) if core_parallel else ("parallel",)

    out = pl.pallas_call(
        mlp_kernel,
        out_shape=jax.ShapeDtypeStruct((B, OUT), jnp.float32),
        grid=grid,
        in_specs=[
            pl.BlockSpec((TB, IN_DIM), lambda i: (i, 0)),   # x: streamed f32 tiles
            const((IN_DIM, HID)), const((1, HID)),          # fc1 (resident)
            const((HID, HID)),    const((1, HID)),          # fc2 (resident)
            const((HID, HID)),    const((1, HID)),          # fc3 (resident)
            const((HID, OUT)),    const((1, OUT)),          # fc4 (resident)
        ],
        out_specs=pl.BlockSpec((TB, OUT), lambda i: (i, 0)),
        compiler_params=pltpu.CompilerParams(
            dimension_semantics=batch_sem,
            vmem_limit_bytes=32 * 1024 * 1024,   # fits v5e/v6e/v7x budgets
        ),
    )(x, w1, b1, w2, b2, w3, b3, w4, b4)

    return out


def init_params(key):
    """Deterministic synthetic params matching the PyTorch Linear shapes
    (stored transposed as (in, out) for row-major matmul)."""
    ks = jax.random.split(key, 8)

    def linear(kw, kb, fan_in, fan_out):
        bound = 1.0 / jnp.sqrt(fan_in)
        w = jax.random.uniform(kw, (fan_in, fan_out), jnp.float32, -bound, bound)
        b = jax.random.uniform(kb, (1, fan_out), jnp.float32, -bound, bound)
        return w, b

    w1, b1 = linear(ks[0], ks[1], IN_DIM, HID)
    w2, b2 = linear(ks[2], ks[3], HID, HID)
    w3, b3 = linear(ks[4], ks[5], HID, HID)
    w4, b4 = linear(ks[6], ks[7], HID, OUT)
    return dict(w1=w1, b1=b1, w2=w2, b2=b2, w3=w3, b3=b3, w4=w4, b4=b4)


def net_forward_ref(x, p):
    """Pure-JAX f32 reference (matches the PyTorch module)."""
    h = jnp.maximum(x @ p["w1"] + p["b1"], 0.0)
    h = jnp.maximum(h @ p["w2"] + p["b2"], 0.0)
    h = jnp.maximum(h @ p["w3"] + p["b3"], 0.0)
    logits = h @ p["w4"] + p["b4"]
    return jax.nn.log_softmax(logits, axis=1)


if __name__ == "__main__":
    key = jax.random.PRNGKey(0)
    k_params, k_x = jax.random.split(key)
    params = init_params(k_params)

    # Small-shape check (single grid step, TB = 8).
    B = 8
    x = jax.random.normal(k_x, (B, IN_DIM), dtype=jnp.float32)
    out = jax.block_until_ready(net_forward(x, params))
    ref = net_forward_ref(x, params)
    assert out.shape == (B, OUT)
    # bf16 matmul inputs with f32 accumulation -> loose absolute tolerance.
    assert jnp.allclose(out, ref, atol=5e-2, rtol=0.0), "mismatch vs reference (B=8)"

    # Multi-tile check: exercises the batch grid, resident weights and a
    # partial final tile (200 rows, TB=64 -> grid=4, last block half-valid).
    B2 = 200
    x2 = jax.random.normal(jax.random.PRNGKey(1), (B2, IN_DIM), dtype=jnp.float32)
    out2 = jax.block_until_ready(net_forward(x2, params, tb=64))
    ref2 = net_forward_ref(x2, params)
    assert out2.shape == (B2, OUT)
    assert jnp.allclose(out2, ref2, atol=5e-2, rtol=0.0), "mismatch vs reference (B=200)"

    print("KERNEL_OK")
</pallas_src>

<mosaic_0001>
module attributes {stable_mosaic.version = 11 : i64} {
  func.func @mlp_kernel(%arg0: i32, %arg1: memref<8x784xf32, #tpu.memory_space<vmem>>, %arg2: memref<784x64xbf16, #tpu.memory_space<vmem>>, %arg3: memref<1x64xf32, #tpu.memory_space<vmem>>, %arg4: memref<64x64xbf16, #tpu.memory_space<vmem>>, %arg5: memref<1x64xf32, #tpu.memory_space<vmem>>, %arg6: memref<64x64xbf16, #tpu.memory_space<vmem>>, %arg7: memref<1x64xf32, #tpu.memory_space<vmem>>, %arg8: memref<64x10xbf16, #tpu.memory_space<vmem>>, %arg9: memref<1x10xf32, #tpu.memory_space<vmem>>, %arg10: memref<8x10xf32, #tpu.memory_space<vmem>>) attributes {dimension_semantics = [#tpu.dimension_semantics<parallel>], iteration_bounds = array<i64: 1>, scalar_prefetch = 0 : i64, scratch_operands = 0 : i64, tpu.core_type = #tpu.core_type<tc>, window_params = [{transform_indices = @transform_0, window_bounds = array<i64: 8, 784>}, {pipeline_mode = #tpu.pipeline_mode<synchronous>, transform_indices = @transform_1, window_bounds = array<i64: 784, 64>}, {pipeline_mode = #tpu.pipeline_mode<synchronous>, transform_indices = @transform_2, window_bounds = array<i64: 1, 64>}, {pipeline_mode = #tpu.pipeline_mode<synchronous>, transform_indices = @transform_3, window_bounds = array<i64: 64, 64>}, {pipeline_mode = #tpu.pipeline_mode<synchronous>, transform_indices = @transform_4, window_bounds = array<i64: 1, 64>}, {pipeline_mode = #tpu.pipeline_mode<synchronous>, transform_indices = @transform_5, window_bounds = array<i64: 64, 64>}, {pipeline_mode = #tpu.pipeline_mode<synchronous>, transform_indices = @transform_6, window_bounds = array<i64: 1, 64>}, {pipeline_mode = #tpu.pipeline_mode<synchronous>, transform_indices = @transform_7, window_bounds = array<i64: 64, 10>}, {pipeline_mode = #tpu.pipeline_mode<synchronous>, transform_indices = @transform_8, window_bounds = array<i64: 1, 10>}, {transform_indices = @transform_9, window_bounds = array<i64: 8, 10>}]} {
    %c0 = arith.constant 0 : index
    %c0_0 = arith.constant 0 : index
    %0 = vector.load %arg1[%c0, %c0_0] : memref<8x784xf32, #tpu.memory_space<vmem>>, vector<8x784xf32>
    %1 = arith.truncf %0 : vector<8x784xf32> to vector<8x784xbf16>
    %c0_1 = arith.constant 0 : index
    %c0_2 = arith.constant 0 : index
    %2 = vector.load %arg2[%c0_1, %c0_2] : memref<784x64xbf16, #tpu.memory_space<vmem>>, vector<784x64xbf16>
    %cst = arith.constant dense<0.000000e+00> : vector<8x64xf32>
    %3 = tpu.matmul %1, %2, %cst {dimension_numbers = #tpu.dot_dimension_numbers<[1], [0], [0], [1], [0, 0, 1, 1], [], []>} : vector<8x784xbf16>, vector<784x64xbf16>, vector<8x64xf32> -> vector<8x64xf32>
    %c0_3 = arith.constant 0 : index
    %c0_4 = arith.constant 0 : index
    %4 = vector.load %arg3[%c0_3, %c0_4] : memref<1x64xf32, #tpu.memory_space<vmem>>, vector<1x64xf32>
    %5 = vector.broadcast %4 : vector<1x64xf32> to vector<8x64xf32>
    %6 = arith.addf %3, %5 : vector<8x64xf32>
    %cst_5 = arith.constant 0.000000e+00 : f32
    %7 = vector.broadcast %cst_5 : f32 to vector<8x64xf32>
    %8 = arith.maximumf %6, %7 : vector<8x64xf32>
    %9 = arith.truncf %8 : vector<8x64xf32> to vector<8x64xbf16>
    %c0_6 = arith.constant 0 : index
    %c0_7 = arith.constant 0 : index
    %10 = vector.load %arg4[%c0_6, %c0_7] : memref<64x64xbf16, #tpu.memory_space<vmem>>, vector<64x64xbf16>
    %cst_8 = arith.constant dense<0.000000e+00> : vector<8x64xf32>
    %11 = tpu.matmul %9, %10, %cst_8 {dimension_numbers = #tpu.dot_dimension_numbers<[1], [0], [0], [1], [0, 0, 1, 1], [], []>} : vector<8x64xbf16>, vector<64x64xbf16>, vector<8x64xf32> -> vector<8x64xf32>
    %c0_9 = arith.constant 0 : index
    %c0_10 = arith.constant 0 : index
    %12 = vector.load %arg5[%c0_9, %c0_10] : memref<1x64xf32, #tpu.memory_space<vmem>>, vector<1x64xf32>
    %13 = vector.broadcast %12 : vector<1x64xf32> to vector<8x64xf32>
    %14 = arith.addf %11, %13 : vector<8x64xf32>
    %cst_11 = arith.constant 0.000000e+00 : f32
    %15 = vector.broadcast %cst_11 : f32 to vector<8x64xf32>
    %16 = arith.maximumf %14, %15 : vector<8x64xf32>
    %17 = arith.truncf %16 : vector<8x64xf32> to vector<8x64xbf16>
    %c0_12 = arith.constant 0 : index
    %c0_13 = arith.constant 0 : index
    %18 = vector.load %arg6[%c0_12, %c0_13] : memref<64x64xbf16, #tpu.memory_space<vmem>>, vector<64x64xbf16>
    %cst_14 = arith.constant dense<0.000000e+00> : vector<8x64xf32>
    %19 = tpu.matmul %17, %18, %cst_14 {dimension_numbers = #tpu.dot_dimension_numbers<[1], [0], [0], [1], [0, 0, 1, 1], [], []>} : vector<8x64xbf16>, vector<64x64xbf16>, vector<8x64xf32> -> vector<8x64xf32>
    %c0_15 = arith.constant 0 : index
    %c0_16 = arith.constant 0 : index
    %20 = vector.load %arg7[%c0_15, %c0_16] : memref<1x64xf32, #tpu.memory_space<vmem>>, vector<1x64xf32>
    %21 = vector.broadcast %20 : vector<1x64xf32> to vector<8x64xf32>
    %22 = arith.addf %19, %21 : vector<8x64xf32>
    %cst_17 = arith.constant 0.000000e+00 : f32
    %23 = vector.broadcast %cst_17 : f32 to vector<8x64xf32>
    %24 = arith.maximumf %22, %23 : vector<8x64xf32>
    %25 = arith.truncf %24 : vector<8x64xf32> to vector<8x64xbf16>
    %c0_18 = arith.constant 0 : index
    %c0_19 = arith.constant 0 : index
    %26 = vector.load %arg8[%c0_18, %c0_19] : memref<64x10xbf16, #tpu.memory_space<vmem>>, vector<64x10xbf16>
    %cst_20 = arith.constant dense<0.000000e+00> : vector<8x10xf32>
    %27 = tpu.matmul %25, %26, %cst_20 {dimension_numbers = #tpu.dot_dimension_numbers<[1], [0], [0], [1], [0, 0, 1, 1], [], []>} : vector<8x64xbf16>, vector<64x10xbf16>, vector<8x10xf32> -> vector<8x10xf32>
    %c0_21 = arith.constant 0 : index
    %c0_22 = arith.constant 0 : index
    %28 = vector.load %arg9[%c0_21, %c0_22] : memref<1x10xf32, #tpu.memory_space<vmem>>, vector<1x10xf32>
    %29 = vector.broadcast %28 : vector<1x10xf32> to vector<8x10xf32>
    %30 = arith.addf %27, %29 : vector<8x10xf32>
    %cst_23 = arith.constant dense<0xFF800000> : vector<8xf32>
    %31 = vector.multi_reduction <maximumf>, %30, %cst_23 [1] : vector<8x10xf32> to vector<8xf32>
    %32 = vector.shape_cast %31 : vector<8xf32> to vector<8x1xf32>
    %33 = vector.broadcast %32 : vector<8x1xf32> to vector<8x10xf32>
    %34 = arith.subf %30, %33 : vector<8x10xf32>
    %35 = math.exp %34 : vector<8x10xf32>
    %cst_24 = arith.constant dense<0.000000e+00> : vector<8xf32>
    %36 = vector.multi_reduction <add>, %35, %cst_24 [1] : vector<8x10xf32> to vector<8xf32>
    %37 = vector.shape_cast %36 : vector<8xf32> to vector<8x1xf32>
    %38 = math.log %37 : vector<8x1xf32>
    %39 = vector.broadcast %38 : vector<8x1xf32> to vector<8x10xf32>
    %40 = arith.subf %34, %39 : vector<8x10xf32>
    %c0_25 = arith.constant 0 : index
    %c0_26 = arith.constant 0 : index
    %41 = vector.load %arg10[%c0_25, %c0_26] : memref<8x10xf32, #tpu.memory_space<vmem>>, vector<8x10xf32>
    tpu.vector_store %arg10[%c0_25, %c0_26], %40 {strides = array<i32>} : memref<8x10xf32, #tpu.memory_space<vmem>>, vector<8x10xf32>,
    return
  }
  func.func @transform_0(%arg0: i32) -> (i32, i32) {
    %c0_i32 = arith.constant 0 : i32
    %c0_i32_0 = arith.constant 0 : i32
    return %arg0, %c0_i32 : i32, i32
  }
  func.func @transform_1(%arg0: i32) -> (i32, i32) {
    %c0_i32 = arith.constant 0 : i32
    %c0_i32_0 = arith.constant 0 : i32
    %c0_i32_1 = arith.constant 0 : i32
    return %c0_i32, %c0_i32_0 : i32, i32
  }
  func.func @transform_2(%arg0: i32) -> (i32, i32) {
    %c0_i32 = arith.constant 0 : i32
    %c0_i32_0 = arith.constant 0 : i32
    %c0_i32_1 = arith.constant 0 : i32
    return %c0_i32, %c0_i32_0 : i32, i32
  }
  func.func @transform_3(%arg0: i32) -> (i32, i32) {
    %c0_i32 = arith.constant 0 : i32
    %c0_i32_0 = arith.constant 0 : i32
    %c0_i32_1 = arith.constant 0 : i32
    return %c0_i32, %c0_i32_0 : i32, i32
  }
  func.func @transform_4(%arg0: i32) -> (i32, i32) {
    %c0_i32 = arith.constant 0 : i32
    %c0_i32_0 = arith.constant 0 : i32
    %c0_i32_1 = arith.constant 0 : i32
    return %c0_i32, %c0_i32_0 : i32, i32
  }
  func.func @transform_5(%arg0: i32) -> (i32, i32) {
    %c0_i32 = arith.constant 0 : i32
    %c0_i32_0 = arith.constant 0 : i32
    %c0_i32_1 = arith.constant 0 : i32
    return %c0_i32, %c0_i32_0 : i32, i32
  }
  func.func @transform_6(%arg0: i32) -> (i32, i32) {
    %c0_i32 = arith.constant 0 : i32
    %c0_i32_0 = arith.constant 0 : i32
    %c0_i32_1 = arith.constant 0 : i32
    return %c0_i32, %c0_i32_0 : i32, i32
  }
  func.func @transform_7(%arg0: i32) -> (i32, i32) {
    %c0_i32 = arith.constant 0 : i32
    %c0_i32_0 = arith.constant 0 : i32
    %c0_i32_1 = arith.constant 0 : i32
    return %c0_i32, %c0_i32_0 : i32, i32
  }
  func.func @transform_8(%arg0: i32) -> (i32, i32) {
    %c0_i32 = arith.constant 0 : i32
    %c0_i32_0 = arith.constant 0 : i32
    %c0_i32_1 = arith.constant 0 : i32
    return %c0_i32, %c0_i32_0 : i32, i32
  }
  func.func @transform_9(%arg0: i32) -> (i32, i32) {
    %c0_i32 = arith.constant 0 : i32
    %c0_i32_0 = arith.constant 0 : i32
    return %arg0, %c0_i32 : i32, i32
  }
}

</mosaic_0001>

<bundles_post_ra>
// kernel: net_forward.1
= control target key start
LH: loop header
LB: loop body
LE: loop exit
PB: predicated region body
PF: predicated region fallthrough
CT: control target
= control target key end

     0   :  { %v1176_v44 = vmov 0.0   ;;  %vm1177_vm0 = vmmov 0   ;;  %vm447_vm1 = vcmask 130048   ;;  %s1475_s0 = inlined_call_operand.vmem [shape: f32[8,784], index: 0, kind: input, shape index: {}]   ;;  %s1476_s1 = inlined_call_operand.vmem [shape: bf16[784,64], index: 1, kind: input, shape index: {}]   ;;  %s1477_s2 = inlined_call_operand.vmem [shape: f32[1,64], index: 2, kind: input, shape index: {}]   ;;  %s1478_s3 = inlined_call_operand.vmem [shape: bf16[64,64], index: 3, kind: input, shape index: {}]   ;;  %s1479_s4 = inlined_call_operand.vmem [shape: f32[1,64], index: 4, kind: input, shape index: {}]   ;;  %s1480_s5 = inlined_call_operand.vmem [shape: bf16[64,64], index: 5, kind: input, shape index: {}]   ;;  %s1481_s6 = inlined_call_operand.vmem [shape: f32[1,64], index: 6, kind: input, shape index: {}]   ;;  %s1482_s7 = inlined_call_operand.vmem [shape: bf16[64,10], index: 7, kind: input, shape index: {}]   ;;  %s1483_s8 = inlined_call_operand.vmem [shape: f32[1,10], index: 8, kind: input, shape index: {}]   ;;  %s1484_s9 = inlined_call_operand.hbm [shape: f32[8,10], index: 9, kind: output, shape index: {}]  }
   0x1   :  { %v1089_v0 = vld [vmem:[%s1476_s1 + $0x78] sm:$0xff]   ;;  %v1093_v4 = vld [vmem:[%s1476_s1 + $0x70] sm:$0xff]   ;;  %v1097_v8 = vld [vmem:[%s1476_s1 + $0x68] sm:$0xff]  }
   0x2   :  { %v1090_v1 = vld [vmem:[%s1476_s1 + $0x38] sm:$0xff]   ;;  %961 = vmatprep.subr.bf16.mxu0 %v1089_v0  ;;  %v1094_v5 = vld [vmem:[%s1476_s1 + $0x30] sm:$0xff]   ;;  %v1098_v9 = vld [vmem:[%s1476_s1 + $0x28] sm:$0xff]  }
   0x3   :  { %v1091_v2 = vld [vmem:[%s1476_s1 + $0xf8] sm:$0xff]   ;;  %962 = vmatpush3.bf16.msra.mxu0 %v1090_v1  ;;  %v1095_v6 = vld [vmem:[%s1476_s1 + $0xf0] sm:$0xff]   ;;  %v1099_v10 = vld [vmem:[%s1476_s1 + $0xe8] sm:$0xff]  }
   0x4   :  { %v1092_v3 = vld [vmem:[%s1476_s1 + $0xb8] sm:$0xff]   ;;  %983 = vmatprep.subr.bf16.mxu1 %v1091_v2  ;;  %963 = vmatprep.subr.bf16.mxu0 %v1093_v4  ;;  %v1096_v7 = vld [vmem:[%s1476_s1 + $0xb0] sm:$0xff]   ;;  %v1100_v11 = vld [vmem:[%s1476_s1 + $0xa8] sm:$0xff]  }
   0x5   :  { %984 = vmatpush3.bf16.msra.mxu1 %v1092_v3  ;;  %v1101_v12 = vld [vmem:[%s1476_s1 + $0x60] sm:$0xff]   ;;  %v1105_v16 = vld [vmem:[%s1476_s1 + $0x58] sm:$0xff]   ;;  %v1109_v20 = vld [vmem:[%s1476_s1 + $0x50] sm:$0xff]  }
   0x6   :  { %985 = vmatprep.subr.bf16.mxu1 %v1095_v6  ;;  %v1102_v13 = vld [vmem:[%s1476_s1 + $0x20] sm:$0xff]   ;;  %v1106_v17 = vld [vmem:[%s1476_s1 + $0x18] sm:$0xff]   ;;  %v1110_v21 = vld [vmem:[%s1476_s1 + $0x10] sm:$0xff]  }
   0x7   :  { %964 = vmatpush3.bf16.msra.mxu0 %v1094_v5  ;;  %v1103_v14 = vld [vmem:[%s1476_s1 + $0xe0] sm:$0xff]   ;;  %v1107_v18 = vld [vmem:[%s1476_s1 + $0xd8] sm:$0xff]   ;;  %v1111_v22 = vld [vmem:[%s1476_s1 + $0xd0] sm:$0xff]  }
   0x8   :  { %965 = vmatprep.subr.bf16.mxu0 %v1097_v8  ;;  %v1104_v15 = vld [vmem:[%s1476_s1 + $0xa0] sm:$0xff]   ;;  %v1108_v19 = vld [vmem:[%s1476_s1 + $0x98] sm:$0xff]   ;;  %v1112_v23 = vld [vmem:[%s1476_s1 + $0x90] sm:$0xff]  }
   0x9   :  { %986 = vmatpush3.bf16.msra.mxu1 %v1096_v7  ;;  %v1113_v24 = vld [vmem:[%s1476_s1 + $0x48] sm:$0xff]   ;;  %v1117_v28 = vld [vmem:[%s1476_s1 + $0x40] sm:$0xff]   ;;  %v1121_v36 = vld [vmem:[%s1476_s1 + $0x178] sm:$0xff]  }
   0xa   :  { %987 = vmatprep.subr.bf16.mxu1 %v1099_v10  ;;  %v1114_v25 = vld [vmem:[%s1476_s1 + $0x8] sm:$0xff]   ;;  %v1118_v29 = vld [vmem:[%s1476_s1] sm:$0xff]   ;;  %v37_v37 = vld [vmem:[%s1475_s0 + $0x18] sm:$0xff] }
   0xb   :  { %966 = vmatpush3.bf16.msra.mxu0 %v1098_v9  ;;  %v1115_v26 = vld [vmem:[%s1476_s1 + $0xc8] sm:$0xff]   ;;  %v1119_v30 = vld [vmem:[%s1476_s1 + $0xc0] sm:$0xff]   ;;  %v44_v38 = vpack.c.bf16 %v37_v37, %v37_v37  ;;  %v1122_v39 = vld [vmem:[%s1476_s1 + $0x138] sm:$0xff]  }
   0xc   :  { %967 = vmatprep.subr.bf16.mxu0 %v1101_v12  ;;  %v1116_v27 = vld [vmem:[%s1476_s1 + $0x88] sm:$0xff]   ;;  %v1120_v33 = vld [vmem:[%s1476_s1 + $0x80] sm:$0xff]   ;;  %v36_v40 = vld [vmem:[%s1475_s0 + $0x10] sm:$0xff] }
   0xd   :  { %988 = vmatpush3.bf16.msra.mxu1 %v1100_v11  ;;  %v35_v31 = vld [vmem:[%s1475_s0 + $0x8] sm:$0xff]  ;;  %v34_v34 = vld [vmem:[%s1475_s0] sm:$0xff]  ;;  %523 = vmatprep.mubr.bf16.mxu1 %v44_v38  ;;  %v43_v41 = vpack.c.bf16 %v36_v40, %v36_v40  ;;  %v1123_v42 = vld [vmem:[%s1476_s1 + $0x170] sm:$0xff]  }
   0xe   :  { %989 = vmatprep.subr.bf16.mxu1 %v1103_v14  ;;  %v42_v32 = vpack.c.bf16 %v35_v31, %v35_v31  ;;  %v41_v35 = vpack.c.bf16 %v34_v34, %v34_v34  ;;  %v1124_v43 = vld [vmem:[%s1476_s1 + $0x130] sm:$0xff]   ;;  %v1125_v45 = vld [vmem:[%s1476_s1 + $0x168] sm:$0xff]   ;;  %v1127_v47 = vld [vmem:[%s1476_s1 + $0x160] sm:$0xff]  }
   0xf   :  { %968 = vmatpush3.bf16.msra.mxu0 %v1102_v13  ;;  %v1126_v46 = vld [vmem:[%s1476_s1 + $0x128] sm:$0xff]   ;;  %v1128_v48 = vld [vmem:[%s1476_s1 + $0x120] sm:$0xff]   ;;  %v1129_v49 = vld [vmem:[%s1476_s1 + $0x158] sm:$0xff]  }
  0x10   :  { %969 = vmatprep.subr.bf16.mxu0 %v1105_v16  ;;  %483 = vmatprep.mubr.bf16.mxu0 %v42_v32  ;;  %v1130_v50 = vld [vmem:[%s1476_s1 + $0x118] sm:$0xff]   ;;  %v1131_v51 = vld [vmem:[%s1476_s1 + $0x150] sm:$0xff]   ;;  %v1137_v53 = vld [vmem:[%s1476_s1 + $0x180] sm:$0xff]  }
  0x11   :  { %990 = vmatpush3.bf16.msra.mxu1 %v1104_v15  ;;  %v1132_v52 = vld [vmem:[%s1476_s1 + $0x110] sm:$0xff]   ;;  %v39_v54 = vld [vmem:[%s1475_s0 + $0x28] sm:$0xff]  ;;  %v1135_v60 = vld [vmem:[%s1476_s1 + $0x140] sm:$0xff]  }
  0x12   :  { %991 = vmatprep.subr.bf16.mxu1 %v1107_v18  ;;  %v1133_v55 = vld [vmem:[%s1476_s1 + $0x148] sm:$0xff]   ;;  %v46_v56 = vpack.c.bf16 %v39_v54, %v39_v54  ;;  %v40_v57 = vld [vmem:[%s1475_s0 + $0x30] sm:$0xff] }
  0x13   :  { %970 = vmatpush3.bf16.msra.mxu0 %v1106_v17  ;;  %v47_v58 = vpack.c.bf16 %v40_v57, %v40_v57  ;;  %v1134_v59 = vld [vmem:[%s1476_s1 + $0x108] sm:$0xff]  }
  0x14   :  { %971 = vmatprep.subr.bf16.mxu0 %v1109_v20 }
  0x15   :  { %992 = vmatpush3.bf16.msra.mxu1 %v1108_v19 }
  0x16   :  { %993 = vmatprep.subr.bf16.mxu1 %v1111_v22 }
  0x17   :  { %972 = vmatpush3.bf16.msra.mxu0 %v1110_v21 }
  0x18   :  { %973 = vmatprep.subr.bf16.mxu0 %v1113_v24 }
  0x19   :  { %994 = vmatpush3.bf16.msra.mxu1 %v1112_v23 }
  0x1a   :  { %995 = vmatprep.subr.bf16.mxu1 %v1115_v26 }
  0x1b   :  { %974 = vmatpush3.bf16.msra.mxu0 %v1114_v25 }
  0x1c   :  { %975 = vmatprep.subr.bf16.mxu0 %v1117_v28 }
  0x1d   :  { %996 = vmatpush3.bf16.msra.mxu1 %v1116_v27 }
  0x1e   :  { %997 = vmatprep.subr.bf16.mxu1 %v1119_v30 }
  0x1f   :  { %976 = vmatpush3.bf16.msra.mxu0 %v1118_v29 }
  0x20   :  { %1005 = vmatprep.subr.bf16.mxu0 %v1121_v36 }
  0x21   :  { %998 = vmatpush3.bf16.msra.mxu1 %v1120_v33 }
  0x22   :  { %484 = vmatmul.mubr.bf16.vlgmr.msra.gmra.mxu0 %v41_v35  ;;  %1044 = vmatprep.subr.bf16.mxu1 %v1176_v44 }
  0x23   :  { %1006 = vmatpush3.bf16.msra.mxu0 %v1122_v39  ;;  %563 = vmatprep.mubr.bf16.mxu0 %v46_v56 }
  0x24   :  { %524 = vmatmul.mubr.bf16.vlgmr.msra.gmra.mxu1 %v43_v41  ;;  %1007 = vmatprep.subr.bf16.mxu0 %v1123_v42 }
  0x25   :  { %1046 = vmatprep.mubr.msk.bf16.mxu1 %vm1177_vm0, %v1176_v44  ;;  %1045 = vmatpush3.bf16.msra.mxu1 %v1137_v53 }
  0x26   :  { %1050 = vmatprep.subr.bf16.mxu1 %v1176_v44 }
  0x27   :  { %1008 = vmatpush3.bf16.msra.mxu0 %v1124_v43 }
  0x28   :  { %1009 = vmatprep.subr.bf16.mxu0 %v1125_v45 }
  0x2b   :  { %1010 = vmatpush3.bf16.msra.mxu0 %v1126_v46 }
  0x2c   :  { %1011 = vmatprep.subr.bf16.mxu0 %v1127_v47  ;;  %1047 = vmatmul.mubr.msk.bf16.vlgmr.msra.gmra.mxu1 %vm447_vm1, %v47_v58 }
  0x2d   :  { %1058 = vmatprep.mubr.msk.bf16.mxu1 %vm1177_vm0, %v1176_v44 }
  0x2f   :  { %1012 = vmatpush3.bf16.msra.mxu0 %v1128_v48 }
  0x30   :  { %1013 = vmatprep.subr.bf16.mxu0 %v1129_v49 }
  0x33   :  { %1014 = vmatpush3.bf16.msra.mxu0 %v1130_v50 }
  0x34   :  { %1015 = vmatprep.subr.bf16.mxu0 %v1131_v51 }
  0x37   :  { %1016 = vmatpush3.bf16.msra.mxu0 %v1132_v52 }
  0x38   :  { %1017 = vmatprep.subr.bf16.mxu0 %v1133_v55 }
  0x39   :  { %14 = vsyncpa [#allocation3], 0  ;;  %v1136_v61 = vld [vmem:[%s1476_s1 + $0x100] sm:$0xff]   ;;  %v1138_v0 = vld [vmem:[%s1478_s3 + $0x18] sm:$0xff]   ;;  %vm652_vm2 = vcmask 523264   ;;  %vm864_vm3 = vcmask 80896  }
  0x3a   :  { %v38_v62 = vld [vmem:[%s1475_s0 + $0x20] sm:$0xff]  ;;  %1051 = vmatpush3.bf16.msra.mxu1 %v1138_v0  ;;  %v1139_v1 = vld [vmem:[%s1478_s3 + $0x10] sm:$0xff]   ;;  %v1140_v2 = vld [vmem:[%s1478_s3 + $0x8] sm:$0xff]  }
  0x3b   :  { %1018 = vmatpush3.bf16.msra.mxu0 %v1134_v59  ;;  %v45_v63 = vpack.c.bf16 %v38_v62, %v38_v62  ;;  %1052 = vmatprep.subr.bf16.mxu1 %v1176_v44  ;;  %v1141_v3 = vld [vmem:[%s1478_s3] sm:$0xff]   ;;  %v1142_v29 = vld [vmem:[%s1480_s5 + $0x18] sm:$0xff]   ;;  %v1143_v31 = vld [vmem:[%s1480_s5 + $0x10] sm:$0xff]  }
  0x3c   :  { %1019 = vmatprep.subr.bf16.mxu0 %v1135_v60  ;;  %v892_v17 = vld [vmem:[%s1477_s2] ss:$0 sm:$0xff]  ;;  %v1144_v32 = vld [vmem:[%s1480_s5 + $0x8] sm:$0xff]   ;;  %v1146_v34 = vld [vmem:[%s1482_s7 + $0x18] sm:$0xff]  }
  0x3d   :  { %v1145_v33 = vld [vmem:[%s1480_s5] sm:$0xff]   ;;  %v1147_v35 = vld [vmem:[%s1482_s7 + $0x10] sm:$0xff]   ;;  %v1148_v45 = vld [vmem:[%s1482_s7 + $0x8] sm:$0xff]  }
  0x3e   :  { %1053 = vmatpush3.bf16.msra.mxu1 %v1139_v1  ;;  %v943_v36 = vld [vmem:[%s1479_s4] ss:$0 sm:$0xff] }
  0x3f   :  { %1020 = vmatpush3.bf16.msra.mxu0 %v1136_v61  ;;  %1054 = vmatprep.subr.bf16.mxu1 %v1176_v44  ;;  %v1149_v46 = vld [vmem:[%s1482_s7] sm:$0xff]  }
  0x40   :  { %1074 = vmatprep.subr.bf16.mxu0 %v1176_v44  ;;  %v949_v47 = vld [vmem:[%s1481_s6] ss:$0 sm:$0xff]  ;;  %s1178_s6 = smov [#allocation2]  }
  0x41   :  { %s884_s7 = sshll.u32 %s1178_s6, 4  ;;  %s885_s7 = int_to_ptr.vmem [resolvable:$true] %s884_s7 }
  0x42   :  { %564 = vmatmul.mubr.bf16.vlgmr.msra.gmra.mxu0 %v45_v63  ;;  %1055 = vmatpush3.bf16.msra.mxu1 %v1140_v2  ;;  %p1159_p1 = scmp.lt.s32.totalorder %s885_s7, %s885_s7 }
  0x43   :  { %1082 = vmatprep.mubr.msk.bf16.mxu0 %vm1177_vm0, %v1176_v44  ;;  %1056 = vmatprep.subr.bf16.mxu1 %v1176_v44 }
  0x44   :  { %1075 = vmatpush3.bf16.msra.mxu0 %v1146_v34 }
  0x45   :  { %1076 = vmatprep.subr.bf16.mxu0 %v1176_v44 }
  0x46   :  { %1057 = vmatpush3.bf16.msra.mxu1 %v1141_v3 }
  0x47   :  { %1062 = vmatprep.subr.bf16.mxu1 %v1176_v44 }
  0x48   :  { %1077 = vmatpush3.bf16.msra.mxu0 %v1147_v35 }
  0x49   :  { %1078 = vmatprep.subr.bf16.mxu0 %v1176_v44 }
  0x4c   :  { %1079 = vmatpush3.bf16.msra.mxu0 %v1148_v45 }
  0x4d   :  { %1080 = vmatprep.subr.bf16.mxu0 %v1176_v44 }
  0x50   :  { %1081 = vmatpush3.bf16.msra.mxu0 %v1149_v46 }
  0xe2   :  { %v977_v4 = vpop.f32.mrf.mxu0 }
  0xe4   :  { %v978_v5 = vpop.f32.mrf.mxu0  ;;  %v999_v6 = vpop.f32.mrf.mxu1 }
  0xe5   :  { %v979_v16 = vadd.f32 %v978_v5, %v977_v4 }
  0xe6   :  { %v980_v7 = vpop.f32.mrf.mxu0  ;;  %v1000_v8 = vpop.f32.mrf.mxu1 }
  0xe7   :  { %v486_v18 = vadd.f32 %v979_v16, %v892_v17  ;;  %v1001_v19 = vadd.f32 %v1000_v8, %v999_v6 }
  0xe8   :  { %v981_v9 = vpop.f32.mrf.mxu0  ;;  %v1002_v10 = vpop.f32.mrf.mxu1 }
  0xe9   :  { %v526_v22 = vadd.f32 %v1001_v19, %v486_v18 }
  0xea   :  { %v1003_v11 = vpop.f32.mrf.mxu1 }
  0xec   :  { %v605_v12 = vpop.f32.mrf.mxu1 }
  0xee   :  { %v1048_v13 = vpop.f32.mrf.mxu1 }
  0xf0   :  { %v608_v14 = vpop.f32.mrf.mxu1 }
  0xf2   :  { %v1049_v15 = vpop.f32.mrf.mxu1 }
 0x102   :  { %v1021_v20 = vpop.f32.mrf.mxu0 }
 0x104   :  { %v1022_v21 = vpop.f32.mrf.mxu0 }
 0x105   :  { %v1023_v23 = vadd.f32 %v1022_v21, %v1021_v20 }
 0x106   :  { %v1024_v24 = vpop.f32.mrf.mxu0 }
 0x107   :  { %v566_v25 = vadd.f32 %v1023_v23, %v526_v22 }
 0x108   :  { %v1025_v26 = vpop.f32.mrf.mxu0 }
 0x109   :  { %v606_v27 = vadd.f32 %v605_v12, %v566_v25 }
 0x10b   :  { %v611_v28 = vmax.f32 %v606_v27, 0.0 }
 0x10d   :  { %v612_v30 = vpack.c.bf16 %v611_v28, %v611_v28 }
 0x10f   :  { %1059 = vmatmul.mubr.msk.bf16.vlgmr.msra.gmra.mxu1 %vm652_vm2, %v612_v30 }
 0x110   :  { %1063 = vmatpush3.bf16.msra.mxu1 %v1142_v29  ;;  %1070 = vmatprep.mubr.msk.bf16.mxu1 %vm1177_vm0, %v1176_v44 }
 0x111   :  { %1064 = vmatprep.subr.bf16.mxu1 %v1176_v44 }
 0x114   :  { %1065 = vmatpush3.bf16.msra.mxu1 %v1143_v31 }
 0x115   :  { %1066 = vmatprep.subr.bf16.mxu1 %v1176_v44 }
 0x118   :  { %1067 = vmatpush3.bf16.msra.mxu1 %v1144_v32 }
 0x119   :  { %1068 = vmatprep.subr.bf16.mxu1 %v1176_v44  ;;  %v955_v44 = vld [vmem:[%s1483_s8] ss:$0 sm:$0xff]  ;;  %s1154_s8 = scalar_lea.vmem %s885_s7, 128 }
 0x11a   :  { %p1155_p0 = scmp.ne.s32.totalorder %s885_s7, %s1154_s8  ;;  %p1160_p2 = scmp.lt.s32.totalorder %s1154_s8, %s1154_s8 }
 0x11c   :  { %1069 = vmatpush3.bf16.msra.mxu1 %v1145_v33  ;;  %p1161_p3 = por %p1160_p2, %p1159_p1 }
 0x11e   :  { %p1162_p4 = pnand %p1161_p3, %p1155_p0 }
 0x1cf   :  { %v690_v37 = vpop.f32.mrf.mxu1 }
 0x1d0   :  { %v691_v38 = vadd.f32 %v943_v36, %v690_v37 }
 0x1d1   :  { %v1060_v39 = vpop.f32.mrf.mxu1 }
 0x1d2   :  { %v696_v40 = vmax.f32 %v691_v38, 0.0 }
 0x1d3   :  { %v693_v41 = vpop.f32.mrf.mxu1 }
 0x1d4   :  { %v697_v42 = vpack.c.bf16 %v696_v40, %v696_v40 }
 0x1d5   :  { %v1061_v43 = vpop.f32.mrf.mxu1 }
 0x1d6   :  { %1071 = vmatmul.mubr.msk.bf16.vlgmr.msra.gmra.mxu1 %vm652_vm2, %v697_v42 }
 0x296   :  { %v774_v48 = vpop.f32.mrf.mxu1 }
 0x297   :  { %v775_v49 = vadd.f32 %v949_v47, %v774_v48 }
 0x298   :  { %v1072_v50 = vpop.f32.mrf.mxu1 }
 0x299   :  { %v780_v51 = vmax.f32 %v775_v49, 0.0 }
 0x29a   :  { %v777_v52 = vpop.f32.mrf.mxu1 }
 0x29b   :  { %v781_v53 = vpack.c.bf16 %v780_v51, %v780_v51 }
 0x29c   :  { %v1073_v54 = vpop.f32.mrf.mxu1 }
 0x29d   :  { %1083 = vmatmul.mubr.msk.bf16.vlgmr.msra.gmra.mxu0 %vm652_vm2, %v781_v53 }
 0x35d   :  { %v858_v55 = vpop.f32.mrf.mxu0 }
 0x35e   :  { %v859_v56 = vadd.f32 %v955_v44, %v858_v55 }
 0x35f   :  { %v1084_v57 = vpop.f32.mrf.mxu0 }
 0x360   :  { %v865_v58 = vsel %vm864_vm3, %v859_v56, -inf }
 0x361   :  { %866 = vmax.xlane.f32.xlu0 %v865_v58  ;;  %v861_v59 = vpop.f32.mrf.mxu0 }
 0x363   :  { %v1085_v60 = vpop.f32.mrf.mxu0 }
 0x3ea   :  { %v867_v61 = vpop.xlane.xlu0 %866 }
 0x3eb   :  { %v868_v62 = vsub.f32 %v859_v56, %v867_v61 }
 0x3ed   :  { %v869_v63 = vmul.f32 1.442695, %v868_v62 }
 0x3ef   :  { %1150 = vpow2.f32 %v869_v63 }
 0x3fc   :  { %v1151_v0 = vpop.eup %1150 }
 0x3fd   :  { %v871_v1 = vsel %vm864_vm3, %v1151_v0, 0.0 }
 0x3fe   :  { %872 = vadd.xlane.f32.xlu0 %v871_v1 }
 0x487   :  { %v873_v2 = vpop.xlane.xlu0 %872 }
 0x488   :  { %1152 = vlog2.f32 %v873_v2 }
 0x495   :  { %v1153_v3 = vpop.eup %1152 }
 0x496   :  { %v875_v4 = vmul.f32 0.6931472, %v1153_v3 }
 0x498   :  { %v876_v5 = vsub.f32 %v868_v62, %v875_v4 }
 0x49a   :  { %877 = vst.msk [vmem:[#allocation2] sm:$0xff] %vm864_vm3, %v876_v5 }
 0x49b   :  { %1165 = shalt.err (!%p1162_p4)
}
 0x49c   :  { %887 = dma.vmem_to_hbm [thread:$0]  %s885_s7, 128, %s1484_s9, [#allocation3]  }
 0x49d   :  { %1174 = dma.done.wait [#allocation3], 128  }
 0x49e   :  { %1175 = vsyncadd [#allocation3], 4294967168 }
 0x49f   :  { %891 = vsyncpa [#allocation3], 1 }

</bundles_post_ra>
